<compile_context>
chip_gen: v7x
topology: tpu7x:2x2x1
jax: 0.10.0
libtpu: 0.0.40
codegen_flags: <defaults>
</compile_context>

<pallas_src>
import functools

import jax
import jax.numpy as jnp
from jax.experimental import pallas as pl
from jax.experimental.pallas import tpu as pltpu


# ----------------------------------------------------------------------------
# Fused kernel: conv (single im2col matmul) + bias + batch-norm, one call.
# ----------------------------------------------------------------------------
def _make_fused_kernel(n_imgs, p_per_img, count, eps, use_bn):
    """Builds the fused conv + bias + batchnorm kernel (single invocation)."""

    def kernel(p_ref, w_ref, b_ref, g_ref, bt_ref, o_ref):
        # p_ref : (K, N*P)      im2col patches, batch folded on the lane axis
        # w_ref : (Cout, K)     conv weight flattened over (Cin, KH, KW)
        # b_ref : (Cout, 1)     conv bias
        # g_ref : (Cout, 1)     BN gamma
        # bt_ref: (Cout, 1)     BN beta
        # o_ref : (N, Cout, P)  final activation, NCHW-flattened, lane-dense
        acc = jnp.dot(w_ref[...], p_ref[...],
                      preferred_element_type=jnp.float32)          # (Cout, N*P)
        acc = acc + b_ref[...]                                      # (Cout,1) bcast

        if use_bn:
            # Training-mode BatchNorm2d: biased batch stats over (N, H, W),
            # i.e. over the whole N*P lane axis of each channel row.
            inv_count = 1.0 / count
            mean = jnp.sum(acc, axis=1, keepdims=True) * inv_count       # (Cout,1)
            centered = acc - mean
            var = jnp.sum(centered * centered, axis=1,
                          keepdims=True) * inv_count                     # (Cout,1)
            scale = g_ref[...] * jax.lax.rsqrt(var + eps)
            acc = centered * scale + bt_ref[...]

        # Un-fold batch from the lane axis.  P is a multiple of 128, so these
        # are static, 128-aligned, full-lane slices (unmasked stores).
        for n in range(n_imgs):
            o_ref[n] = acc[:, n * p_per_img:(n + 1) * p_per_img].astype(o_ref.dtype)

    return kernel


# ----------------------------------------------------------------------------
# Wrapper: NCHW in / NCHW out, mirroring TorusConv2d.forward
# ----------------------------------------------------------------------------
@functools.partial(jax.jit, static_argnames=("use_bn", "eps"))
def torus_conv2d(x_nchw, w_oihw, bias, gamma, beta, *, use_bn=True, eps=1e-5):
    N, Cin, H, W = x_nchw.shape
    Cout, _, KH, KW = w_oihw.shape
    eh, ew = KH // 2, KW // 2

    x = x_nchw.astype(jnp.float32)
    # Circular (torus) padding — identical to the two torch.cat's.
    xp = jnp.pad(x, ((0, 0), (0, 0), (eh, eh), (ew, ew)), mode="wrap")
    Hp, Wp = H + 2 * eh, W + 2 * ew
    Ho, Wo = Hp - KH + 1, Wp - KW + 1            # == H, W
    P = Ho * Wo
    K = Cin * KH * KW
    # Lane-dense layout requires P % 128 == 0 at these shapes (16*16 = 256).
    # TODO(synk): pad P up to a multiple of 128 (mask in-kernel) for other H/W.

    # im2col in XLA (layout plumbing): build patches directly in the
    # (K, N*P) layout the fused matmul consumes.  k = ci*KH*KW + dy*KW + dx
    # to match w_oihw.reshape(Cout, K); columns ordered (n, oy, ox).
    cols = []
    for dy in range(KH):
        for dx in range(KW):
            cols.append(jax.lax.slice(
                xp, (0, 0, dy, dx), (N, Cin, dy + Ho, dx + Wo)))
    pat = jnp.stack(cols, axis=0)                       # (KH*KW, N, Cin, Ho, Wo)
    patches = pat.transpose(2, 0, 1, 3, 4).reshape(K, N * P)       # (K, N*P)

    w2 = w_oihw.reshape(Cout, K).astype(jnp.float32)               # (Cout, K)
    b2 = bias.reshape(Cout, 1).astype(jnp.float32)                 # (Cout, 1)
    g2 = gamma.reshape(Cout, 1).astype(jnp.float32)                # (Cout, 1)
    bt2 = beta.reshape(Cout, 1).astype(jnp.float32)                # (Cout, 1)

    kernel = _make_fused_kernel(N, P, float(N * P), float(eps), bool(use_bn))

    vmem = pl.BlockSpec(memory_space=pltpu.MemorySpace.VMEM)
    out = pl.pallas_call(
        kernel,
        out_shape=jax.ShapeDtypeStruct((N, Cout, P), jnp.float32),
        in_specs=[vmem, vmem, vmem, vmem, vmem],
        out_specs=vmem,
        # Single invocation (no grid): total VMEM footprint ~100 KB, far below
        # every generation's limit; per-step pipelining would be pure overhead
        # at these sizes.  For large N on v7x, reintroduce a core-splittable
        # batch axis.
    )(patches, w2, b2, g2, bt2)

    return out.reshape(N, Cout, Ho, Wo)


# ----------------------------------------------------------------------------
# Pure-JAX reference replicating the PyTorch forward exactly.
# ----------------------------------------------------------------------------
def _reference(x, w, b, gamma, beta, eps=1e-5):
    KH, KW = w.shape[2], w.shape[3]
    eh, ew = KH // 2, KW // 2
    h = jnp.concatenate([x[:, :, :, -ew:], x, x[:, :, :, :ew]], axis=3)
    h = jnp.concatenate([h[:, :, -eh:], h, h[:, :, :eh]], axis=2)
    h = jax.lax.conv_general_dilated(
        h, w, window_strides=(1, 1), padding="VALID",
        dimension_numbers=("NCHW", "OIHW", "NCHW"))
    h = h + b[None, :, None, None]
    mean = jnp.mean(h, axis=(0, 2, 3), keepdims=True)
    var = jnp.mean((h - mean) ** 2, axis=(0, 2, 3), keepdims=True)  # biased
    h = (h - mean) / jnp.sqrt(var + eps)
    h = h * gamma[None, :, None, None] + beta[None, :, None, None]
    return h


if __name__ == "__main__":
    # Small shapes consistent with the module: N=2, Cin=4, H=W=16,
    # kernel_size=(3,3), Cout=8, bn=True.
    N, Cin, H, W = 2, 4, 16, 16
    Cout, KH, KW = 8, 3, 3

    key = jax.random.PRNGKey(0)
    kx, kw, kb = jax.random.split(key, 3)
    x = jax.random.normal(kx, (N, Cin, H, W), dtype=jnp.float32)
    w = jax.random.normal(kw, (Cout, Cin, KH, KW), dtype=jnp.float32) * 0.1
    b = jax.random.normal(kb, (Cout,), dtype=jnp.float32) * 0.1
    gamma = 1.0 + 0.1 * jnp.arange(Cout, dtype=jnp.float32)
    beta = 0.05 * jnp.arange(Cout, dtype=jnp.float32)

    out = torus_conv2d(x, w, b, gamma, beta, use_bn=True)
    out = jax.block_until_ready(out)

    ref = _reference(x, w, b, gamma, beta)
    assert out.shape == (N, Cout, H, W), out.shape
    assert jnp.allclose(out, ref, atol=1e-4, rtol=1e-4), (
        float(jnp.max(jnp.abs(out - ref))))

    print("KERNEL_OK")
</pallas_src>

<mosaic_0001>
module attributes {stable_mosaic.version = 11 : i64} {
  func.func @kernel(%arg0: memref<36x512xf32, #tpu.memory_space<vmem>>, %arg1: memref<8x36xf32, #tpu.memory_space<vmem>>, %arg2: memref<8x1xf32, #tpu.memory_space<vmem>>, %arg3: memref<8x1xf32, #tpu.memory_space<vmem>>, %arg4: memref<8x1xf32, #tpu.memory_space<vmem>>, %arg5: memref<2x8x256xf32, #tpu.memory_space<vmem>>) attributes {dimension_semantics = [], scalar_prefetch = 0 : i64, scratch_operands = 0 : i64, tpu.core_type = #tpu.core_type<tc>} {
    %c0 = arith.constant 0 : index
    %c0_0 = arith.constant 0 : index
    %0 = vector.load %arg1[%c0, %c0_0] : memref<8x36xf32, #tpu.memory_space<vmem>>, vector<8x36xf32>
    %c0_1 = arith.constant 0 : index
    %c0_2 = arith.constant 0 : index
    %1 = vector.load %arg0[%c0_1, %c0_2] : memref<36x512xf32, #tpu.memory_space<vmem>>, vector<36x512xf32>
    %cst = arith.constant dense<0.000000e+00> : vector<8x512xf32>
    %2 = tpu.matmul %0, %1, %cst {dimension_numbers = #tpu.dot_dimension_numbers<[1], [0], [0], [1], [0, 0, 1, 1], [], []>} : vector<8x36xf32>, vector<36x512xf32>, vector<8x512xf32> -> vector<8x512xf32>
    %c0_3 = arith.constant 0 : index
    %c0_4 = arith.constant 0 : index
    %3 = vector.load %arg2[%c0_3, %c0_4] : memref<8x1xf32, #tpu.memory_space<vmem>>, vector<8x1xf32>
    %4 = vector.broadcast %3 : vector<8x1xf32> to vector<8x512xf32>
    %5 = arith.addf %2, %4 : vector<8x512xf32>
    %cst_5 = arith.constant dense<0.000000e+00> : vector<8xf32>
    %6 = vector.multi_reduction <add>, %5, %cst_5 [1] : vector<8x512xf32> to vector<8xf32>
    %7 = vector.shape_cast %6 : vector<8xf32> to vector<8x1xf32>
    %cst_6 = arith.constant 0.001953125 : f32
    %8 = vector.broadcast %cst_6 : f32 to vector<8x1xf32>
    %9 = arith.mulf %7, %8 : vector<8x1xf32>
    %10 = vector.broadcast %9 : vector<8x1xf32> to vector<8x512xf32>
    %11 = arith.subf %5, %10 : vector<8x512xf32>
    %12 = arith.mulf %11, %11 : vector<8x512xf32>
    %cst_7 = arith.constant dense<0.000000e+00> : vector<8xf32>
    %13 = vector.multi_reduction <add>, %12, %cst_7 [1] : vector<8x512xf32> to vector<8xf32>
    %14 = vector.shape_cast %13 : vector<8xf32> to vector<8x1xf32>
    %cst_8 = arith.constant 0.001953125 : f32
    %15 = vector.broadcast %cst_8 : f32 to vector<8x1xf32>
    %16 = arith.mulf %14, %15 : vector<8x1xf32>
    %c0_9 = arith.constant 0 : index
    %c0_10 = arith.constant 0 : index
    %17 = vector.load %arg3[%c0_9, %c0_10] : memref<8x1xf32, #tpu.memory_space<vmem>>, vector<8x1xf32>
    %cst_11 = arith.constant 9.99999974E-6 : f32
    %18 = vector.broadcast %cst_11 : f32 to vector<8x1xf32>
    %19 = arith.addf %16, %18 : vector<8x1xf32>
    %20 = math.rsqrt %19 : vector<8x1xf32>
    %21 = arith.mulf %17, %20 : vector<8x1xf32>
    %22 = vector.broadcast %21 : vector<8x1xf32> to vector<8x512xf32>
    %23 = arith.mulf %11, %22 : vector<8x512xf32>
    %c0_12 = arith.constant 0 : index
    %c0_13 = arith.constant 0 : index
    %24 = vector.load %arg4[%c0_12, %c0_13] : memref<8x1xf32, #tpu.memory_space<vmem>>, vector<8x1xf32>
    %25 = vector.broadcast %24 : vector<8x1xf32> to vector<8x512xf32>
    %26 = arith.addf %23, %25 : vector<8x512xf32>
    %27 = vector.extract_strided_slice %26 {offsets = [0, 0], sizes = [8, 256], strides = [1, 1]} : vector<8x512xf32> to vector<8x256xf32>
    %c0_14 = arith.constant 0 : index
    %c0_15 = arith.constant 0 : index
    %c0_16 = arith.constant 0 : index
    %28 = vector.load %arg5[%c0_14, %c0_15, %c0_16] : memref<2x8x256xf32, #tpu.memory_space<vmem>>, vector<1x8x256xf32>
    %29 = vector.shape_cast %28 : vector<1x8x256xf32> to vector<8x256xf32>
    %30 = vector.shape_cast %27 : vector<8x256xf32> to vector<1x8x256xf32>
    tpu.vector_store %arg5[%c0_14, %c0_15, %c0_16], %30 {strides = array<i32>} : memref<2x8x256xf32, #tpu.memory_space<vmem>>, vector<1x8x256xf32>,
    %31 = vector.extract_strided_slice %26 {offsets = [0, 256], sizes = [8, 256], strides = [1, 1]} : vector<8x512xf32> to vector<8x256xf32>
    %c1 = arith.constant 1 : index
    %c0_17 = arith.constant 0 : index
    %c0_18 = arith.constant 0 : index
    %32 = vector.load %arg5[%c1, %c0_17, %c0_18] : memref<2x8x256xf32, #tpu.memory_space<vmem>>, vector<1x8x256xf32>
    %33 = vector.shape_cast %32 : vector<1x8x256xf32> to vector<8x256xf32>
    %34 = vector.shape_cast %31 : vector<8x256xf32> to vector<1x8x256xf32>
    tpu.vector_store %arg5[%c1, %c0_17, %c0_18], %34 {strides = array<i32>} : memref<2x8x256xf32, #tpu.memory_space<vmem>>, vector<1x8x256xf32>,
    return
  }
}

</mosaic_0001>

<bundles_post_ra>
// kernel: torus_conv2d.1
= control target key start
LH: loop header
LB: loop body
LE: loop exit
PB: predicated region body
PF: predicated region fallthrough
CT: control target
= control target key end

     0   :  { %v288_v3 = vmov 0.0   ;;  %v289_v8 = vmov 0   ;;  %vm51_vm0 = vcmask 1043456   ;;  %vm47_vm1 = vcmask 293888   ;;  %s404_s0 = inlined_call_operand.vmem [shape: f32[36,512], index: 0, kind: input, shape index: {}]   ;;  %s405_s2 = inlined_call_operand.vmem [shape: f32[8,1], index: 2, kind: input, shape index: {}]   ;;  %s406_s1 = inlined_call_operand.vmem [shape: f32[8,36], index: 1, kind: input, shape index: {}]   ;;  %s407_s3 = inlined_call_operand.vmem [shape: f32[8,1], index: 3, kind: input, shape index: {}]   ;;  %s408_s4 = inlined_call_operand.vmem [shape: f32[8,1], index: 4, kind: input, shape index: {}]   ;;  %s409_s5 = inlined_call_operand.vmem [shape: f32[2,8,256], index: 5, kind: output, shape index: {}]  }
   0x1   :  { %v22_v0 = vld [vmem:[%s404_s0 + $0x8] sm:$0xff]  ;;  %v24_v2 = vld [vmem:[%s404_s0 + $0x18] sm:$0xff]  ;;  %128 = vmatprep.mubr.f32.mxu0 %v288_v3  ;;  %199 = vmatprep.mubr.f32.mxu1 %v288_v3  ;;  %v21_v6 = vld [vmem:[%s404_s0] sm:$0xff] }
   0x2   :  { %v26_v1 = vld [vmem:[%s404_s0 + $0x28] sm:$0xff]  ;;  %v28_v5 = vld [vmem:[%s404_s0 + $0x38] sm:$0xff]  ;;  %v25_v7 = vld [vmem:[%s404_s0 + $0x20] sm:$0xff]  ;;  %284 = vset.pattern.permute.xlu0 %v289_v8  ;;  %285 = vset.pattern.permute.xlu1 %v289_v8 }
   0x3   :  { %v266_v4 = vpack.c.bf16 %v26_v1, %v22_v0  ;;  %v274_v9 = vpack.c.bf16 %v28_v5, %v24_v2  ;;  %v268_v10 = vpack.c.bf16 %v25_v7, %v21_v6  ;;  %v23_v11 = vld [vmem:[%s404_s0 + $0x10] sm:$0xff]  ;;  %v30_v13 = vld [vmem:[%s404_s0 + $0x48] sm:$0xff]  ;;  %v32_v16 = vld [vmem:[%s404_s0 + $0x58] sm:$0xff] }
   0x4   :  { %v27_v12 = vld [vmem:[%s404_s0 + $0x30] sm:$0xff]  ;;  %v34_v15 = vld [vmem:[%s404_s0 + $0x68] sm:$0xff]  ;;  %v36_v17 = vld [vmem:[%s404_s0 + $0x78] sm:$0xff] }
   0x5   :  { %267 = vmatprep.subr.bf16.mxu0 %v266_v4  ;;  %v276_v14 = vpack.c.bf16 %v27_v12, %v23_v11  ;;  %275 = vmatprep.subr.bf16.mxu1 %v274_v9  ;;  %v270_v18 = vpack.c.bf16 %v34_v15, %v30_v13  ;;  %v278_v19 = vpack.c.bf16 %v36_v17, %v32_v16  ;;  %v29_v20 = vld [vmem:[%s404_s0 + $0x40] sm:$0xff]  ;;  %v31_v22 = vld [vmem:[%s404_s0 + $0x50] sm:$0xff]  ;;  %v38_v26 = vld [vmem:[%s404_s0 + $0x88] sm:$0xf] }
   0x6   :  { %269 = vmatpush1.bf16.msra.mxu0 %v268_v10  ;;  %v33_v21 = vld [vmem:[%s404_s0 + $0x60] sm:$0xff]  ;;  %v35_v24 = vld [vmem:[%s404_s0 + $0x70] sm:$0xff]  ;;  %v40_v27 = vld [vmem:[%s404_s0 + $0x98] sm:$0xf] }
   0x7   :  { %277 = vmatpush1.bf16.msra.mxu1 %v276_v14  ;;  %v272_v23 = vpack.c.bf16 %v33_v21, %v29_v20  ;;  %271 = vmatprep.subr.bf16.mxu0 %v270_v18  ;;  %v280_v25 = vpack.c.bf16 %v35_v24, %v31_v22  ;;  %v41_v28 = vld [vmem:[%s405_s2] sm:$0xff]  ;;  %v39_v30 = vld [vmem:[%s404_s0 + $0x90] sm:$0xf] }
   0x8   :  { %279 = vmatprep.subr.bf16.mxu1 %v278_v19  ;;  %44 = vperm.xlu0 %284, %v41_v28   ;;  %v37_v29 = vld [vmem:[%s404_s0 + $0x80] sm:$0xf] }
   0x9   :  { %v20_v31 = vld [vmem:[%s406_s1] sm:$0xff] }
   0xa   :  { %273 = vmatpush1.bf16.msra.mxu0 %v272_v23  ;;  %v226_v60 = vld [vmem:[%s407_s3] sm:$0xff] }
   0xb   :  { %281 = vmatpush1.bf16.msra.mxu1 %v280_v25  ;;  %258 = vmatprep.subr.msk.mxu0 %vm51_vm0, %v38_v26  ;;  %v239_v63 = vld [vmem:[%s408_s4] sm:$0xff] }
   0xc   :  { %261 = vmatprep.subr.msk.mxu1 %vm51_vm0, %v40_v27 }
   0xe   :  { %259 = vmatpush1.msk.msra.mxu0 %vm51_vm0, %v37_v29 }
   0xf   :  { %262 = vmatpush1.msk.msra.mxu1 %vm51_vm0, %v39_v30  ;;  %260 = vmatmul.mubr.msk.f32.vlgmr.msra.gmra.mrb[0].mxu0 %vm47_vm1, %v20_v31 }
  0x10   :  { %263 = vmatmul.mubr.msk.f32.vlgmr.msra.gmra.mrb[0].mxu1 %vm47_vm1, %v20_v31 }
  0x87   :  { %v45_v32 = vpop.permute.xlu0 %44 }
  0xe2   :  { %v130_v33 = vpop.f32.mrb[0].mxu0 }
  0xe3   :  { %v131_v34 = vadd.f32 %v130_v33, %v45_v32  ;;  %v201_v35 = vpop.f32.mrb[0].mxu1  ;;  %v132_v36 = vpop.f32.mrb[1].mxu0 }
  0xe4   :  { %v133_v37 = vadd.f32 %v132_v36, %v45_v32  ;;  %v203_v38 = vpop.f32.mrb[1].mxu1  ;;  %v202_v39 = vadd.f32 %v201_v35, %v45_v32 }
  0xe5   :  { %v204_v41 = vadd.f32 %v203_v38, %v45_v32 }
  0xe6   :  { %v206_v40 = vadd.f32 %v133_v37, %v131_v34 }
  0xe8   :  { %v207_v42 = vadd.f32 %v206_v40, %v202_v39 }
  0xea   :  { %v208_v43 = vadd.f32 %v207_v42, %v204_v41 }
  0xec   :  { %209 = vadd.xlane.f32.xlu0 %v208_v43 }
 0x179   :  { %v210_v44 = vpop.xlane.xlu0 %209 }
 0x17a   :  { %v211_v45 = vmul.f32 0.001953125, %v210_v44 }
 0x17c   :  { %v212_v46 = vsub.f32 %v131_v34, %v211_v45  ;;  %v213_v47 = vsub.f32 %v133_v37, %v211_v45  ;;  %v214_v48 = vsub.f32 %v202_v39, %v211_v45  ;;  %v215_v49 = vsub.f32 %v204_v41, %v211_v45 }
 0x17e   :  { %v216_v50 = vmul.f32 %v212_v46, %v212_v46  ;;  %v217_v51 = vmul.f32 %v213_v47, %v213_v47  ;;  %v218_v52 = vmul.f32 %v214_v48, %v214_v48  ;;  %v219_v54 = vmul.f32 %v215_v49, %v215_v49 }
 0x180   :  { %v220_v53 = vadd.f32 %v217_v51, %v216_v50 }
 0x182   :  { %v221_v55 = vadd.f32 %v220_v53, %v218_v52 }
 0x184   :  { %v222_v56 = vadd.f32 %v221_v55, %v219_v54 }
 0x186   :  { %223 = vadd.xlane.f32.xlu1 %v222_v56 }
 0x213   :  { %v224_v57 = vpop.xlane.xlu1 %223 }
 0x214   :  { %v225_v58 = vmul.f32 0.001953125, %v224_v57 }
 0x216   :  { %v227_v59 = vadd.f32 1e-05, %v225_v58 }
 0x218   :  { %286 = vrsqrt.f32 %v227_v59 }
 0x222   :  { %v287_v61 = vpop.eup %286 }
 0x223   :  { %v229_v62 = vmul.f32 %v287_v61, %v226_v60 }
 0x225   :  { %232 = vperm.xlu1 %285, %v229_v62  }
 0x229   :  { %242 = vperm.xlu1 %285, %v239_v63  }
 0x2a4   :  { %v233_v0 = vpop.permute.xlu1 %232 }
 0x2a5   :  { %v235_v1 = vmul.f32 %v233_v0, %v212_v46  ;;  %v236_v2 = vmul.f32 %v233_v0, %v213_v47  ;;  %v237_v3 = vmul.f32 %v233_v0, %v214_v48  ;;  %v238_v4 = vmul.f32 %v233_v0, %v215_v49 }
 0x2a8   :  { %v243_v5 = vpop.permute.xlu1 %242 }
 0x2a9   :  { %v245_v6 = vadd.f32 %v243_v5, %v235_v1  ;;  %v246_v7 = vadd.f32 %v243_v5, %v236_v2  ;;  %v247_v8 = vadd.f32 %v243_v5, %v237_v3  ;;  %v248_v9 = vadd.f32 %v243_v5, %v238_v4 }
 0x2ab   :  { %249 = vst [vmem:[%s409_s5] sm:$0xff] %v245_v6  ;;  %250 = vst [vmem:[%s409_s5 + $0x8] sm:$0xff] %v246_v7 }
 0x2ac   :  { %264 = vst [vmem:[%s409_s5 + $0x10] sm:$0xff] %v247_v8  ;;  %265 = vst [vmem:[%s409_s5 + $0x18] sm:$0xff] %v248_v9 }

</bundles_post_ra>
